<compile_context>
chip_gen: v5e
topology: v5e:2x2
jax: 0.10.0
libtpu: 0.0.40
codegen_flags: <defaults>
</compile_context>

<pallas_src>
import functools

import jax
import jax.numpy as jnp
from jax import lax
from jax.experimental import pallas as pl
from jax.experimental.pallas import tpu as pltpu


def _rpc_kernel(x_ref, w1_ref, w2_ref, b1_ref, b2_ref, o_ref, *,
                ksize, times, hw, wo):
    # x_ref  : (T, inp, L)    f32, L = times*hw; row = (image, group),
    #                         lane l = t*hw + p (sub-channel t, spatial p)
    # w1_ref : (K*K, inp, L)  grouped-conv taps, BN1 scale AND boundary masks folded in
    # w2_ref : (inp, outp, 1) 1x1 weights (transposed), BN2 scale folded in
    # b1_ref : (inp, 1)       folded BN1 bias
    # b2_ref : (outp, 1)      folded BN2 bias
    # o_ref  : (T, outp, hw)
    K = ksize
    P = K // 2
    L = x_ref.shape[2]
    inp = x_ref.shape[1]

    x = x_ref[...]                                   # (T, inp, L)
    w1 = w1_ref[...]                                 # hoisted single load

    # ---- grouped KxK conv: one lane roll (XLU slot) + one fused mask*weight
    # FMA (VPU) per tap.  Out-of-image taps carry a zero weight, so roll wrap
    # (within a row, across t-segments, or around L) never contaminates acc.
    ctr = P * K + P
    acc = x * w1[ctr][None]                          # centre tap: no shift
    for kh in range(K):
        for kw in range(K):
            if kh == P and kw == P:
                continue
            k = kh * K + kw
            d = (kh - P) * wo + (kw - P)             # flat spatial offset
            shifted = pltpu.roll(x, shift=(-d) % L, axis=2)
            acc = acc + shifted * w1[k][None]

    # ---- reduce the `times` sub-channels of each group: they are hw-sized
    # lane segments, so the reduction is (times-1) lane rolls + adds — no
    # sublane re-layout; only the first hw lanes are kept.
    red = acc
    for t in range(1, times):
        red = red + pltpu.roll(acc, shift=(L - t * hw) % L, axis=2)
    y = red[..., :hw]                                # (T, inp, hw)

    # ---- BN1 bias + ReLU (scale already folded into w1) ----
    y = jnp.maximum(y + b1_ref[...][None], 0.0)

    # ---- 1x1 conv (+ folded BN2 scale) as unrolled VPU FMAs: channel counts
    # are far too small to feed the MXU.
    w2 = w2_ref[...]                                 # (inp, outp, 1)
    z = y[:, 0:1, :] * w2[0][None]                   # (T,1,hw)*(1,outp,1) -> (T,outp,hw)
    for g in range(1, inp):
        z = z + y[:, g:g + 1, :] * w2[g][None]

    # ---- BN2 bias + ReLU ----
    o_ref[...] = jnp.maximum(z + b2_ref[...][None], 0.0)


def reshaped_convolution_forward(x, params, *, down_size, kernel_size, times,
                                 block_bytes=2 << 20):
    """x: (B, C, H, W) float32 NCHW.  Returns (B, outp, H//ds, W//ds) NCHW.

    No host-side repack of x or the output: only contiguous (free) reshapes.
    """
    W1, W2, (g1, be1, m1, v1), (g2, be2, m2, v2) = params
    eps = 1e-5
    B, C, H, W = x.shape
    ds, K = down_size, kernel_size
    assert K % 2 == 1, "kernel_size must be odd (pad = K//2, 'same' output)"
    P = K // 2
    inp = W1.shape[0]
    outp = W2.shape[0]
    Ho, Wo = H // ds, W // ds
    hw = Ho * Wo
    cin = inp * times
    L = times * hw
    assert C * ds * ds == cin and W1.shape[1] == times

    # ---- get_newsz (contiguous view) + split of the channel dim into
    # (group g, sub-channel t): free row-major reshapes, NO transpose of x.
    # Row (b, g) holds its `times` sub-channels as hw-sized lane segments.
    x3 = x.reshape(B, inp, L)

    # ---- fold inference-mode BN scales into the conv weights (exact: linear
    # and pre-ReLU).  Pre-splat the grouped-conv taps to (K*K, inp, L) with
    # the spatial boundary masks folded in: the kernel DMAs / computes no
    # masks, and each tap is one roll + one FMA.
    s1 = g1 / jnp.sqrt(v1 + eps)
    b1 = (be1 - m1 * s1).reshape(inp, 1)
    s2 = g2 / jnp.sqrt(v2 + eps)
    b2 = (be2 - m2 * s2).reshape(outp, 1)

    pos = jnp.arange(hw)
    h_idx, w_idx = pos // Wo, pos % Wo
    valid = []
    for kh in range(K):
        for kw in range(K):
            dh, dw = kh - P, kw - P
            valid.append(((h_idx + dh >= 0) & (h_idx + dh < Ho) &
                          (w_idx + dw >= 0) & (w_idx + dw < Wo)))
    valid = jnp.stack(valid).astype(jnp.float32)              # (K*K, hw)

    W1s = (W1 * s1[:, None, None, None]).reshape(inp, times, K * K)
    w1m = (jnp.transpose(W1s, (2, 0, 1))[:, :, :, None] *
           valid[:, None, None, :]).reshape(K * K, inp, L)    # (K*K, inp, L)
    w2t = (W2.reshape(outp, inp) * s2[:, None]).T.reshape(inp, outp, 1)

    # ---- image-tile sizing from a VMEM budget (block_bytes per pipeline
    # buffer of x; Pallas double-buffers, and inp<8 sublane padding adds ~2x,
    # so totals stay well under v7x's 64 MiB).  Force >= 2 grid steps whenever
    # B >= 2 so the 'parallel' axis shards across both v7x TensorCores.
    img_bytes = cin * hw * 4
    imgs_per_tile = max(1, block_bytes // img_bytes)
    if B >= 2:
        imgs_per_tile = min(imgs_per_tile, B // 2)
    imgs_per_tile = max(1, min(imgs_per_tile, B))
    while B % imgs_per_tile:            # exact grid: no ragged tail, no fallback
        imgs_per_tile -= 1
    n_tiles = B // imgs_per_tile

    kernel = functools.partial(_rpc_kernel, ksize=K, times=times, hw=hw, wo=Wo)

    out = pl.pallas_call(
        kernel,
        out_shape=jax.ShapeDtypeStruct((B, outp, hw), jnp.float32),
        grid_spec=pltpu.PrefetchScalarGridSpec(
            num_scalar_prefetch=0,
            grid=(n_tiles,),
            in_specs=[
                pl.BlockSpec((imgs_per_tile, inp, L), lambda i: (i, 0, 0)),
                pl.BlockSpec((K * K, inp, L), lambda i: (0, 0, 0)),
                pl.BlockSpec((inp, outp, 1), lambda i: (0, 0, 0)),
                pl.BlockSpec((inp, 1), lambda i: (0, 0)),
                pl.BlockSpec((outp, 1), lambda i: (0, 0)),
            ],
            out_specs=pl.BlockSpec((imgs_per_tile, outp, hw),
                                   lambda i: (i, 0, 0)),
        ),
        compiler_params=pltpu.CompilerParams(
            dimension_semantics=("parallel",),
            # above v5e (16 MiB) / v6e (32 MiB) scoped defaults, < v7x physical
            vmem_limit_bytes=48 << 20,
        ),
    )(x3, w1m, w2t, b1, b2)

    # free reshape back to NCHW; no output transpose / un-pack.
    return out.reshape(B, outp, Ho, Wo)


def reference_forward(x, params, *, down_size, kernel_size, times):
    """Pure-JAX reference mirroring the PyTorch module (inference-mode BN)."""
    W1, W2, (g1, be1, m1, v1), (g2, be2, m2, v2) = params
    eps = 1e-5
    B, C, H, W = x.shape
    ds, K = down_size, kernel_size
    P = K // 2
    inp = W1.shape[0]

    xr = x.reshape(B, inp * times, H // ds, W // ds)
    y = lax.conv_general_dilated(
        xr, W1, window_strides=(1, 1), padding=[(P, P), (P, P)],
        feature_group_count=inp,
        dimension_numbers=('NCHW', 'OIHW', 'NCHW'),
        precision=lax.Precision.HIGHEST)
    y = (y - m1[None, :, None, None]) / jnp.sqrt(v1[None, :, None, None] + eps) \
        * g1[None, :, None, None] + be1[None, :, None, None]
    y = jnp.maximum(y, 0.0)
    z = lax.conv_general_dilated(
        y, W2, window_strides=(1, 1), padding=[(0, 0), (0, 0)],
        dimension_numbers=('NCHW', 'OIHW', 'NCHW'),
        precision=lax.Precision.HIGHEST)
    z = (z - m2[None, :, None, None]) / jnp.sqrt(v2[None, :, None, None] + eps) \
        * g2[None, :, None, None] + be2[None, :, None, None]
    return jnp.maximum(z, 0.0)


if __name__ == "__main__":
    # module config: inchannels=4, outchannels=8, down_size=2, kernel_size=3,
    # mode='RPC', times=4  (requires C*ds^2 == inchannels*times)
    B, C, H, W = 2, 4, 16, 16
    ds, K, times = 2, 3, 4
    inp, outp = 4, 8

    keys = jax.random.split(jax.random.PRNGKey(0), 12)
    x = jax.random.normal(keys[0], (B, C, H, W), jnp.float32)
    W1 = jax.random.normal(keys[1], (inp, times, K, K), jnp.float32) * 0.2
    W2 = jax.random.normal(keys[2], (outp, inp, 1, 1), jnp.float32) * 0.2
    g1 = jax.random.uniform(keys[3], (inp,), jnp.float32, 0.5, 1.5)
    be1 = jax.random.normal(keys[4], (inp,), jnp.float32) * 0.1
    m1 = jax.random.normal(keys[5], (inp,), jnp.float32) * 0.1
    v1 = jax.random.uniform(keys[6], (inp,), jnp.float32, 0.5, 1.5)
    g2 = jax.random.uniform(keys[7], (outp,), jnp.float32, 0.5, 1.5)
    be2 = jax.random.normal(keys[8], (outp,), jnp.float32) * 0.1
    m2 = jax.random.normal(keys[9], (outp,), jnp.float32) * 0.1
    v2 = jax.random.uniform(keys[10], (outp,), jnp.float32, 0.5, 1.5)

    params = (W1, W2, (g1, be1, m1, v1), (g2, be2, m2, v2))

    out = reshaped_convolution_forward(
        x, params, down_size=ds, kernel_size=K, times=times)
    out = jax.block_until_ready(out)

    ref = reference_forward(x, params, down_size=ds, kernel_size=K, times=times)
    assert out.shape == (B, outp, H // ds, W // ds), out.shape
    max_err = float(jnp.max(jnp.abs(out - ref)))
    assert jnp.allclose(out, ref, atol=2e-2, rtol=2e-2), max_err

    print("KERNEL_OK")
</pallas_src>

<mosaic_0001>
module attributes {stable_mosaic.version = 11 : i64} {
  func.func @_rpc_kernel(%arg0: i32, %arg1: memref<1x4x256xf32, #tpu.memory_space<vmem>>, %arg2: memref<9x4x256xf32, #tpu.memory_space<vmem>>, %arg3: memref<4x8x1xf32, #tpu.memory_space<vmem>>, %arg4: memref<4x1xf32, #tpu.memory_space<vmem>>, %arg5: memref<8x1xf32, #tpu.memory_space<vmem>>, %arg6: memref<1x8x64xf32, #tpu.memory_space<vmem>>) attributes {dimension_semantics = [#tpu.dimension_semantics<parallel>], iteration_bounds = array<i64: 2>, scalar_prefetch = 0 : i64, scratch_operands = 0 : i64, tpu.core_type = #tpu.core_type<tc>, window_params = [{transform_indices = @transform_0, window_bounds = array<i64: 1, 4, 256>}, {pipeline_mode = #tpu.pipeline_mode<synchronous>, transform_indices = @transform_1, window_bounds = array<i64: 9, 4, 256>}, {pipeline_mode = #tpu.pipeline_mode<synchronous>, transform_indices = @transform_2, window_bounds = array<i64: 4, 8, 1>}, {pipeline_mode = #tpu.pipeline_mode<synchronous>, transform_indices = @transform_3, window_bounds = array<i64: 4, 1>}, {pipeline_mode = #tpu.pipeline_mode<synchronous>, transform_indices = @transform_4, window_bounds = array<i64: 8, 1>}, {transform_indices = @transform_5, window_bounds = array<i64: 1, 8, 64>}]} {
    %c0 = arith.constant 0 : index
    %c0_0 = arith.constant 0 : index
    %c0_1 = arith.constant 0 : index
    %0 = vector.load %arg1[%c0, %c0_0, %c0_1] : memref<1x4x256xf32, #tpu.memory_space<vmem>>, vector<1x4x256xf32>
    %c0_2 = arith.constant 0 : index
    %c0_3 = arith.constant 0 : index
    %c0_4 = arith.constant 0 : index
    %1 = vector.load %arg2[%c0_2, %c0_3, %c0_4] : memref<9x4x256xf32, #tpu.memory_space<vmem>>, vector<9x4x256xf32>
    %2 = vector.extract_strided_slice %1 {offsets = [4, 0, 0], sizes = [1, 4, 256], strides = [1, 1, 1]} : vector<9x4x256xf32> to vector<1x4x256xf32>
    %3 = vector.shape_cast %2 : vector<1x4x256xf32> to vector<4x256xf32>
    %4 = vector.shape_cast %3 : vector<4x256xf32> to vector<1x4x256xf32>
    %5 = arith.mulf %0, %4 : vector<1x4x256xf32>
    %c9_i32 = arith.constant 9 : i32
    %6 = tpu.dynamic_rotate %0 by %c9_i32 dim 2 : vector<1x4x256xf32>, i32 -> vector<1x4x256xf32>
    %7 = vector.extract_strided_slice %1 {offsets = [0, 0, 0], sizes = [1, 4, 256], strides = [1, 1, 1]} : vector<9x4x256xf32> to vector<1x4x256xf32>
    %8 = vector.shape_cast %7 : vector<1x4x256xf32> to vector<4x256xf32>
    %9 = vector.shape_cast %8 : vector<4x256xf32> to vector<1x4x256xf32>
    %10 = arith.mulf %6, %9 : vector<1x4x256xf32>
    %11 = arith.addf %5, %10 : vector<1x4x256xf32>
    %c8_i32 = arith.constant 8 : i32
    %12 = tpu.dynamic_rotate %0 by %c8_i32 dim 2 : vector<1x4x256xf32>, i32 -> vector<1x4x256xf32>
    %13 = vector.extract_strided_slice %1 {offsets = [1, 0, 0], sizes = [1, 4, 256], strides = [1, 1, 1]} : vector<9x4x256xf32> to vector<1x4x256xf32>
    %14 = vector.shape_cast %13 : vector<1x4x256xf32> to vector<4x256xf32>
    %15 = vector.shape_cast %14 : vector<4x256xf32> to vector<1x4x256xf32>
    %16 = arith.mulf %12, %15 : vector<1x4x256xf32>
    %17 = arith.addf %11, %16 : vector<1x4x256xf32>
    %c7_i32 = arith.constant 7 : i32
    %18 = tpu.dynamic_rotate %0 by %c7_i32 dim 2 : vector<1x4x256xf32>, i32 -> vector<1x4x256xf32>
    %19 = vector.extract_strided_slice %1 {offsets = [2, 0, 0], sizes = [1, 4, 256], strides = [1, 1, 1]} : vector<9x4x256xf32> to vector<1x4x256xf32>
    %20 = vector.shape_cast %19 : vector<1x4x256xf32> to vector<4x256xf32>
    %21 = vector.shape_cast %20 : vector<4x256xf32> to vector<1x4x256xf32>
    %22 = arith.mulf %18, %21 : vector<1x4x256xf32>
    %23 = arith.addf %17, %22 : vector<1x4x256xf32>
    %c1_i32 = arith.constant 1 : i32
    %24 = tpu.dynamic_rotate %0 by %c1_i32 dim 2 : vector<1x4x256xf32>, i32 -> vector<1x4x256xf32>
    %25 = vector.extract_strided_slice %1 {offsets = [3, 0, 0], sizes = [1, 4, 256], strides = [1, 1, 1]} : vector<9x4x256xf32> to vector<1x4x256xf32>
    %26 = vector.shape_cast %25 : vector<1x4x256xf32> to vector<4x256xf32>
    %27 = vector.shape_cast %26 : vector<4x256xf32> to vector<1x4x256xf32>
    %28 = arith.mulf %24, %27 : vector<1x4x256xf32>
    %29 = arith.addf %23, %28 : vector<1x4x256xf32>
    %c255_i32 = arith.constant 255 : i32
    %30 = tpu.dynamic_rotate %0 by %c255_i32 dim 2 : vector<1x4x256xf32>, i32 -> vector<1x4x256xf32>
    %31 = vector.extract_strided_slice %1 {offsets = [5, 0, 0], sizes = [1, 4, 256], strides = [1, 1, 1]} : vector<9x4x256xf32> to vector<1x4x256xf32>
    %32 = vector.shape_cast %31 : vector<1x4x256xf32> to vector<4x256xf32>
    %33 = vector.shape_cast %32 : vector<4x256xf32> to vector<1x4x256xf32>
    %34 = arith.mulf %30, %33 : vector<1x4x256xf32>
    %35 = arith.addf %29, %34 : vector<1x4x256xf32>
    %c249_i32 = arith.constant 249 : i32
    %36 = tpu.dynamic_rotate %0 by %c249_i32 dim 2 : vector<1x4x256xf32>, i32 -> vector<1x4x256xf32>
    %37 = vector.extract_strided_slice %1 {offsets = [6, 0, 0], sizes = [1, 4, 256], strides = [1, 1, 1]} : vector<9x4x256xf32> to vector<1x4x256xf32>
    %38 = vector.shape_cast %37 : vector<1x4x256xf32> to vector<4x256xf32>
    %39 = vector.shape_cast %38 : vector<4x256xf32> to vector<1x4x256xf32>
    %40 = arith.mulf %36, %39 : vector<1x4x256xf32>
    %41 = arith.addf %35, %40 : vector<1x4x256xf32>
    %c248_i32 = arith.constant 248 : i32
    %42 = tpu.dynamic_rotate %0 by %c248_i32 dim 2 : vector<1x4x256xf32>, i32 -> vector<1x4x256xf32>
    %43 = vector.extract_strided_slice %1 {offsets = [7, 0, 0], sizes = [1, 4, 256], strides = [1, 1, 1]} : vector<9x4x256xf32> to vector<1x4x256xf32>
    %44 = vector.shape_cast %43 : vector<1x4x256xf32> to vector<4x256xf32>
    %45 = vector.shape_cast %44 : vector<4x256xf32> to vector<1x4x256xf32>
    %46 = arith.mulf %42, %45 : vector<1x4x256xf32>
    %47 = arith.addf %41, %46 : vector<1x4x256xf32>
    %c247_i32 = arith.constant 247 : i32
    %48 = tpu.dynamic_rotate %0 by %c247_i32 dim 2 : vector<1x4x256xf32>, i32 -> vector<1x4x256xf32>
    %49 = vector.extract_strided_slice %1 {offsets = [8, 0, 0], sizes = [1, 4, 256], strides = [1, 1, 1]} : vector<9x4x256xf32> to vector<1x4x256xf32>
    %50 = vector.shape_cast %49 : vector<1x4x256xf32> to vector<4x256xf32>
    %51 = vector.shape_cast %50 : vector<4x256xf32> to vector<1x4x256xf32>
    %52 = arith.mulf %48, %51 : vector<1x4x256xf32>
    %53 = arith.addf %47, %52 : vector<1x4x256xf32>
    %c192_i32 = arith.constant 192 : i32
    %54 = tpu.dynamic_rotate %53 by %c192_i32 dim 2 : vector<1x4x256xf32>, i32 -> vector<1x4x256xf32>
    %55 = arith.addf %53, %54 : vector<1x4x256xf32>
    %c128_i32 = arith.constant 128 : i32
    %56 = tpu.dynamic_rotate %53 by %c128_i32 dim 2 : vector<1x4x256xf32>, i32 -> vector<1x4x256xf32>
    %57 = arith.addf %55, %56 : vector<1x4x256xf32>
    %c64_i32 = arith.constant 64 : i32
    %58 = tpu.dynamic_rotate %53 by %c64_i32 dim 2 : vector<1x4x256xf32>, i32 -> vector<1x4x256xf32>
    %59 = arith.addf %57, %58 : vector<1x4x256xf32>
    %60 = vector.extract_strided_slice %59 {offsets = [0, 0, 0], sizes = [1, 4, 64], strides = [1, 1, 1]} : vector<1x4x256xf32> to vector<1x4x64xf32>
    %c0_5 = arith.constant 0 : index
    %c0_6 = arith.constant 0 : index
    %61 = vector.load %arg4[%c0_5, %c0_6] : memref<4x1xf32, #tpu.memory_space<vmem>>, vector<4x1xf32>
    %62 = vector.shape_cast %61 : vector<4x1xf32> to vector<1x4x1xf32>
    %63 = vector.broadcast %62 : vector<1x4x1xf32> to vector<1x4x64xf32>
    %64 = arith.addf %60, %63 : vector<1x4x64xf32>
    %cst = arith.constant 0.000000e+00 : f32
    %65 = vector.broadcast %cst : f32 to vector<1x4x64xf32>
    %66 = arith.maximumf %64, %65 : vector<1x4x64xf32>
    %c0_7 = arith.constant 0 : index
    %c0_8 = arith.constant 0 : index
    %c0_9 = arith.constant 0 : index
    %67 = vector.load %arg3[%c0_7, %c0_8, %c0_9] : memref<4x8x1xf32, #tpu.memory_space<vmem>>, vector<4x8x1xf32>
    %68 = vector.extract_strided_slice %66 {offsets = [0, 0, 0], sizes = [1, 1, 64], strides = [1, 1, 1]} : vector<1x4x64xf32> to vector<1x1x64xf32>
    %69 = vector.extract_strided_slice %67 {offsets = [0, 0, 0], sizes = [1, 8, 1], strides = [1, 1, 1]} : vector<4x8x1xf32> to vector<1x8x1xf32>
    %70 = vector.shape_cast %69 : vector<1x8x1xf32> to vector<8x1xf32>
    %71 = vector.shape_cast %70 : vector<8x1xf32> to vector<1x8x1xf32>
    %72 = vector.broadcast %68 : vector<1x1x64xf32> to vector<1x8x64xf32>
    %73 = vector.broadcast %71 : vector<1x8x1xf32> to vector<1x8x64xf32>
    %74 = arith.mulf %72, %73 : vector<1x8x64xf32>
    %75 = vector.extract_strided_slice %66 {offsets = [0, 1, 0], sizes = [1, 1, 64], strides = [1, 1, 1]} : vector<1x4x64xf32> to vector<1x1x64xf32>
    %76 = vector.extract_strided_slice %67 {offsets = [1, 0, 0], sizes = [1, 8, 1], strides = [1, 1, 1]} : vector<4x8x1xf32> to vector<1x8x1xf32>
    %77 = vector.shape_cast %76 : vector<1x8x1xf32> to vector<8x1xf32>
    %78 = vector.shape_cast %77 : vector<8x1xf32> to vector<1x8x1xf32>
    %79 = vector.broadcast %75 : vector<1x1x64xf32> to vector<1x8x64xf32>
    %80 = vector.broadcast %78 : vector<1x8x1xf32> to vector<1x8x64xf32>
    %81 = arith.mulf %79, %80 : vector<1x8x64xf32>
    %82 = arith.addf %74, %81 : vector<1x8x64xf32>
    %83 = vector.extract_strided_slice %66 {offsets = [0, 2, 0], sizes = [1, 1, 64], strides = [1, 1, 1]} : vector<1x4x64xf32> to vector<1x1x64xf32>
    %84 = vector.extract_strided_slice %67 {offsets = [2, 0, 0], sizes = [1, 8, 1], strides = [1, 1, 1]} : vector<4x8x1xf32> to vector<1x8x1xf32>
    %85 = vector.shape_cast %84 : vector<1x8x1xf32> to vector<8x1xf32>
    %86 = vector.shape_cast %85 : vector<8x1xf32> to vector<1x8x1xf32>
    %87 = vector.broadcast %83 : vector<1x1x64xf32> to vector<1x8x64xf32>
    %88 = vector.broadcast %86 : vector<1x8x1xf32> to vector<1x8x64xf32>
    %89 = arith.mulf %87, %88 : vector<1x8x64xf32>
    %90 = arith.addf %82, %89 : vector<1x8x64xf32>
    %91 = vector.extract_strided_slice %66 {offsets = [0, 3, 0], sizes = [1, 1, 64], strides = [1, 1, 1]} : vector<1x4x64xf32> to vector<1x1x64xf32>
    %92 = vector.extract_strided_slice %67 {offsets = [3, 0, 0], sizes = [1, 8, 1], strides = [1, 1, 1]} : vector<4x8x1xf32> to vector<1x8x1xf32>
    %93 = vector.shape_cast %92 : vector<1x8x1xf32> to vector<8x1xf32>
    %94 = vector.shape_cast %93 : vector<8x1xf32> to vector<1x8x1xf32>
    %95 = vector.broadcast %91 : vector<1x1x64xf32> to vector<1x8x64xf32>
    %96 = vector.broadcast %94 : vector<1x8x1xf32> to vector<1x8x64xf32>
    %97 = arith.mulf %95, %96 : vector<1x8x64xf32>
    %98 = arith.addf %90, %97 : vector<1x8x64xf32>
    %c0_10 = arith.constant 0 : index
    %c0_11 = arith.constant 0 : index
    %99 = vector.load %arg5[%c0_10, %c0_11] : memref<8x1xf32, #tpu.memory_space<vmem>>, vector<8x1xf32>
    %100 = vector.shape_cast %99 : vector<8x1xf32> to vector<1x8x1xf32>
    %101 = vector.broadcast %100 : vector<1x8x1xf32> to vector<1x8x64xf32>
    %102 = arith.addf %98, %101 : vector<1x8x64xf32>
    %cst_12 = arith.constant 0.000000e+00 : f32
    %103 = vector.broadcast %cst_12 : f32 to vector<1x8x64xf32>
    %104 = arith.maximumf %102, %103 : vector<1x8x64xf32>
    %c0_13 = arith.constant 0 : index
    %c0_14 = arith.constant 0 : index
    %c0_15 = arith.constant 0 : index
    %105 = vector.load %arg6[%c0_13, %c0_14, %c0_15] : memref<1x8x64xf32, #tpu.memory_space<vmem>>, vector<1x8x64xf32>
    tpu.vector_store %arg6[%c0_13, %c0_14, %c0_15], %104 {strides = array<i32>} : memref<1x8x64xf32, #tpu.memory_space<vmem>>, vector<1x8x64xf32>,
    return
  }
  func.func @transform_0(%arg0: i32) -> (i32, i32, i32) {
    %c0_i32 = arith.constant 0 : i32
    %c0_i32_0 = arith.constant 0 : i32
    %c0_i32_1 = arith.constant 0 : i32
    return %arg0, %c0_i32, %c0_i32_0 : i32, i32, i32
  }
  func.func @transform_1(%arg0: i32) -> (i32, i32, i32) {
    %c0_i32 = arith.constant 0 : i32
    %c0_i32_0 = arith.constant 0 : i32
    %c0_i32_1 = arith.constant 0 : i32
    %c0_i32_2 = arith.constant 0 : i32
    return %c0_i32, %c0_i32_0, %c0_i32_1 : i32, i32, i32
  }
  func.func @transform_2(%arg0: i32) -> (i32, i32, i32) {
    %c0_i32 = arith.constant 0 : i32
    %c0_i32_0 = arith.constant 0 : i32
    %c0_i32_1 = arith.constant 0 : i32
    %c0_i32_2 = arith.constant 0 : i32
    return %c0_i32, %c0_i32_0, %c0_i32_1 : i32, i32, i32
  }
  func.func @transform_3(%arg0: i32) -> (i32, i32) {
    %c0_i32 = arith.constant 0 : i32
    %c0_i32_0 = arith.constant 0 : i32
    %c0_i32_1 = arith.constant 0 : i32
    return %c0_i32, %c0_i32_0 : i32, i32
  }
  func.func @transform_4(%arg0: i32) -> (i32, i32) {
    %c0_i32 = arith.constant 0 : i32
    %c0_i32_0 = arith.constant 0 : i32
    %c0_i32_1 = arith.constant 0 : i32
    return %c0_i32, %c0_i32_0 : i32, i32
  }
  func.func @transform_5(%arg0: i32) -> (i32, i32, i32) {
    %c0_i32 = arith.constant 0 : i32
    %c0_i32_0 = arith.constant 0 : i32
    %c0_i32_1 = arith.constant 0 : i32
    return %arg0, %c0_i32, %c0_i32_0 : i32, i32, i32
  }
}

</mosaic_0001>

<bundles_post_ra>
// kernel: tpu_custom_call.1
= control target key start
LH: loop header
LB: loop body
LE: loop exit
PB: predicated region body
PF: predicated region fallthrough
CT: control target
= control target key end

     0   :  { %10 = vsyncpa [#allocation3], 0  ;;  %s1066_s0 = inlined_call_operand.vmem [shape: f32[2,4,256], index: 0, kind: input, shape index: {}]   ;;  %s1067_s1 = inlined_call_operand.hbm [shape: f32[9,4,256], index: 1, kind: input, shape index: {}]   ;;  %s1068_s2 = inlined_call_operand.vmem [shape: f32[4,8,1], index: 2, kind: input, shape index: {}]   ;;  %s1069_s3 = inlined_call_operand.vmem [shape: f32[4,1], index: 3, kind: input, shape index: {}]   ;;  %s1070_s4 = inlined_call_operand.vmem [shape: f32[8,1], index: 4, kind: input, shape index: {}]   ;;  %s1071_s5 = inlined_call_operand.hbm [shape: f32[2,8,64], index: 5, kind: output, shape index: {}]  }
   0x1   :  { %11 = vsyncpa [#allocation4], 0 }
   0x2   :  { %13 = vsyncpa [#allocation4 + $0x1], 0  ;;  %s866_s18 = smov 0   ;;  %s868_s19 = smov 0  }
   0x3   :  { %s870_s20 = smov 0   ;;  %s872_s21 = smov 0  }
   0x4 LB: > { %s887_s22 = sadd.s32 4294967295, %s821_s21   ;;  %s646_s23 = sadd.s32 4294967294, %s821_s21   ;;  %s821_s21 = sphi %s872_s21, %s1077_s21   ;;  %s817_s20 = sphi %s870_s20, %s1076_s20   ;;  %s813_s19 = sphi %s868_s19, %s1075_s19   ;;  %s809_s18 = sphi %s866_s18, %s1074_s18  }
   0x5   : > { %s891_s24 = sadd.s32 1, %s821_s21   ;;  %s136_s25 = sadd.s32 1, %s817_s20 }
   0x6   : > { %s133_s26 = ssub.s32 %s821_s21, %s891_s24  ;;  %p146_p0 = scmp.ne.s32.totalorder %s817_s20, %s813_s19 }
   0x7   : > { %p134_p1 = scmp.eq.s32.totalorder %s133_s26, 0  ;;  %p147_p2 = scmp.eq.s32.totalorder %s887_s22, 1 }
   0x8   : > { %p152_p3 = scmp.ne.s32.totalorder %s813_s19, %s809_s18  ;;  %p153_p4 = scmp.eq.s32.totalorder %s646_s23, 1 }
   0x9   : > { %s902_s27 = scalar_select %p134_p1, %s817_s20, %s136_s25  }
   0xa   : > { %p904_p5 = por %p147_p2, %p146_p0  ;;  %p908_p6 = por %p153_p4, %p152_p3 }
   0xb   : > { %p647_p7 = scmp.ge.s32.totalorder %s821_s21, 1  ;;  %p160_p8 = scmp.lt.s32.totalorder %s821_s21, 3 }
   0xc   : > { %p674_p9 = scmp.eq.s32.totalorder %s887_s22, 0  ;;  %s171_s7 = sshll.u32 %s1067_s1, 4  ;;  %s172_s7 = int_to_ptr.hbm [resolvable:$true] %s171_s7 }
   0xd   : > { %p161_p10 = pnand %p647_p7, %p160_p8  ;;  %s823_s8 = smov [#allocation2]  }
   0xe   : > { %s173_s9 = sshll.u32 %s823_s8, 4  ;;  %s824_s10 = smov 128   ;;  %s174_s9 = int_to_ptr.vmem [resolvable:$true] %s173_s9 }
   0xf   : > { %p666_p11 = pneg %p161_p10  ;;  %s825_s11 = smov 8  }
  0x10   : > { %206 = sbr.rel (%p161_p10) target bundleno = 438 (0x1b6), region = 40 }
  0x11   : > { %p667_p12 = pnand %p674_p9, %p666_p11 }
  0x13   : > { %669 = dma.hbm_to_vmem [thread:$0]  (!%p667_p12), %s172_s7, 1152, %s174_s9, [#allocation3], %s824_s10, %s824_s10, %s825_s11  }
  0x15   : > { %800 = dma.done.wait (%p674_p9), [#allocation3], 1152  }
  0x16   : > { %802 = vsyncadd (%p674_p9), [#allocation3], 4294966144  ;;  %p235_p13 = scmp.lt.s32.totalorder %s887_s22, 1  ;;  %v241_v1 = vld [vmem:[#allocation2] sm:$0xff]  ;;  %s826_s17 = smov 9   ;;  %v242_v6 = vld [vmem:[#allocation2 + $0x8] sm:$0xff]  ;;  %v261_v41 = vlaneseq }
  0x17   : > { %s827_s23 = smov 8   ;;  %v243_v11 = vld [vmem:[#allocation2 + $0x10] sm:$0xff]  ;;  %s828_s25 = smov 7   ;;  %v244_v16 = vld [vmem:[#allocation2 + $0x18] sm:$0xff]  ;;  %v246_v21 = vld [vmem:[#allocation2 + $0x28] sm:$0xff]  ;;  %vm277_vm3 = vcmask 1043456  }
  0x18   : > { %s236_s12 = scalar_select %p235_p13, %s887_s22, 1  ;;  %v247_v26 = vld [vmem:[#allocation2 + $0x30] sm:$0xff]  ;;  %v248_v31 = vld [vmem:[#allocation2 + $0x38] sm:$0xff]  ;;  %v249_v44 = vld [vmem:[#allocation2 + $0x40] sm:$0xff]  ;;  %v967_v45 = vand.u32 127, %v261_v41  ;;  %vm557_vm10 = vcmask 523264  }
  0x19   : > { %s829_s26 = smov 1   ;;  %s830_s30 = smov 127   ;;  %v245_v53 = vld [vmem:[#allocation2 + $0x20] sm:$0xff] }
  0x1a   : > { %s659_s13 = sshll.u32 %s236_s12, 3  ;;  %s831_s6 = smov 121   ;;  %vm263_vm0 = vcmp.lt.s32.totalorder %v967_v45, 9  ;;  %vm290_vm1 = vcmp.lt.s32.totalorder %v967_v45, 8  ;;  %vm316_vm2 = vcmp.lt.s32.totalorder %v967_v45, 7  ;;  %vm342_vm4 = vcmp.lt.s32.totalorder %v967_v45, 1 }
  0x1b   : > { %s239_s16 = scalar_lea.vmem %s1066_s0, %s659_s13  ;;  %s832_s7 = smov 120   ;;  %vm368_vm5 = vcmp.lt.s32.totalorder %v967_v45, 127  ;;  %vm394_vm6 = vcmp.lt.s32.totalorder %v967_v45, 121  ;;  %vm420_vm7 = vcmp.lt.s32.totalorder %v967_v45, 120  ;;  %vm446_vm8 = vcmp.lt.s32.totalorder %v967_v45, 119 }
  0x1c   : > { %v929_v0 = vld [vmem:[%s239_s16] sm:$0xff]  ;;  %s833_s8 = smov 119   ;;  %s835_s9 = smov 64   ;;  %vm473_vm9 = vcmp.lt.s32.totalorder %v967_v45, 64 }
  0x1d   : > { %252 = vst [vmem:[#allocation1] ss:$2 sm:$0xff] %v929_v0  ;;  %v250_v60 = vmul.f32 %v245_v53, %v929_v0 }
  0x24   : > { %v253_v2 = vld.sshfl [vmem:[#allocation1] sm:$0xff pattern:$0x75316420]  ;;  %v254_v3 = vld.sshfl [vmem:[#allocation1 + $0x8] sm:$0xff pattern:$0x75316420] }
  0x25   : > { %257 = vrot.lane.b32.xlu0 %v253_v2, %s826_s17  ;;  %267 = vst [vmem:[#allocation1] ss:$2 sm:$0xff] %v241_v1 }
  0x2c   : > { %v932_v4 = vld.sshfl [vmem:[#allocation1] sm:$0xff pattern:$0x75316420]  ;;  %v934_v5 = vld.sshfl [vmem:[#allocation1 + $0x8] sm:$0xff pattern:$0x75316420] }
  0x2d   : > { %281 = vst [vmem:[#allocation1] ss:$2 sm:$0xff] %v929_v0  ;;  %259 = vrot.lane.b32.xlu0 %v254_v3, %s826_s17 }
  0x34   : > { %v282_v7 = vld.sshfl [vmem:[#allocation1] sm:$0xff pattern:$0x75316420]  ;;  %v283_v8 = vld.sshfl [vmem:[#allocation1 + $0x8] sm:$0xff pattern:$0x75316420] }
  0x35   : > { %286 = vrot.lane.b32.xlu1 %v282_v7, %s827_s23  ;;  %294 = vst [vmem:[#allocation1] ss:$2 sm:$0xff] %v242_v6 }
  0x3c   : > { %v937_v9 = vld.sshfl [vmem:[#allocation1] sm:$0xff pattern:$0x75316420]  ;;  %v939_v10 = vld.sshfl [vmem:[#allocation1 + $0x8] sm:$0xff pattern:$0x75316420] }
  0x3d   : > { %288 = vrot.lane.b32.xlu1 %v283_v8, %s827_s23  ;;  %307 = vst [vmem:[#allocation1] ss:$2 sm:$0xff] %v929_v0 }
  0x44   : > { %v308_v12 = vld.sshfl [vmem:[#allocation1] sm:$0xff pattern:$0x75316420]  ;;  %v309_v13 = vld.sshfl [vmem:[#allocation1 + $0x8] sm:$0xff pattern:$0x75316420] }
  0x45   : > { %320 = vst [vmem:[#allocation1] ss:$2 sm:$0xff] %v243_v11  ;;  %312 = vrot.lane.b32.xlu2 %v308_v12, %s828_s25 }
  0x4c   : > { %v942_v14 = vld.sshfl [vmem:[#allocation1] sm:$0xff pattern:$0x75316420]  ;;  %v944_v15 = vld.sshfl [vmem:[#allocation1 + $0x8] sm:$0xff pattern:$0x75316420] }
  0x4d   : > { %333 = vst [vmem:[#allocation1] ss:$2 sm:$0xff] %v929_v0  ;;  %314 = vrot.lane.b32.xlu2 %v309_v13, %s828_s25  ;;  %s775_s25 = scalar_lea.hbm %s1071_s5, 16 }
  0x54   : > { %v334_v17 = vld.sshfl [vmem:[#allocation1] sm:$0xff pattern:$0x75316420]  ;;  %v335_v18 = vld.sshfl [vmem:[#allocation1 + $0x8] sm:$0xff pattern:$0x75316420] }
  0x55   : > { %338 = vrot.lane.b32.xlu0 %v334_v17, %s829_s26  ;;  %340 = vrot.lane.b32.xlu1 %v335_v18, %s829_s26  ;;  %346 = vst [vmem:[#allocation1] ss:$2 sm:$0xff] %v244_v16 }
  0x5c   : > { %v947_v19 = vld.sshfl [vmem:[#allocation1] sm:$0xff pattern:$0x75316420]  ;;  %v949_v20 = vld.sshfl [vmem:[#allocation1 + $0x8] sm:$0xff pattern:$0x75316420] }
  0x5d   : > { %359 = vst [vmem:[#allocation1] ss:$2 sm:$0xff] %v929_v0 }
  0x64   : > { %v361_v22 = vld.sshfl [vmem:[#allocation1 + $0x8] sm:$0xff pattern:$0x75316420]  ;;  %v360_v23 = vld.sshfl [vmem:[#allocation1] sm:$0xff pattern:$0x75316420] }
  0x65   : > { %366 = vrot.lane.b32.xlu0 %v361_v22, %s830_s30  ;;  %372 = vst [vmem:[#allocation1] ss:$2 sm:$0xff] %v246_v21  ;;  %364 = vrot.lane.b32.xlu2 %v360_v23, %s830_s30 }
  0x6c   : > { %v952_v24 = vld.sshfl [vmem:[#allocation1] sm:$0xff pattern:$0x75316420]  ;;  %v954_v25 = vld.sshfl [vmem:[#allocation1 + $0x8] sm:$0xff pattern:$0x75316420] }
  0x6d   : > { %385 = vst [vmem:[#allocation1] ss:$2 sm:$0xff] %v929_v0 }
  0x74   : > { %v387_v27 = vld.sshfl [vmem:[#allocation1 + $0x8] sm:$0xff pattern:$0x75316420]  ;;  %v386_v28 = vld.sshfl [vmem:[#allocation1] sm:$0xff pattern:$0x75316420] }
  0x75   : > { %390 = vrot.lane.b32.xlu1 %v386_v28, %s831_s6  ;;  %398 = vst [vmem:[#allocation1] ss:$2 sm:$0xff] %v247_v26  ;;  %392 = vrot.lane.b32.xlu2 %v387_v27, %s831_s6  ;;  %s232_s6 = sand.u32 1, %s813_s19  }
  0x7c   : > { %v957_v29 = vld.sshfl [vmem:[#allocation1] sm:$0xff pattern:$0x75316420]  ;;  %v959_v30 = vld.sshfl [vmem:[#allocation1 + $0x8] sm:$0xff pattern:$0x75316420] }
  0x7d   : > { %411 = vst [vmem:[#allocation1] ss:$2 sm:$0xff] %v929_v0 }
  0x84   : > { %v413_v32 = vld.sshfl [vmem:[#allocation1 + $0x8] sm:$0xff pattern:$0x75316420]  ;;  %v412_v33 = vld.sshfl [vmem:[#allocation1] sm:$0xff pattern:$0x75316420] }
  0x85   : > { %418 = vrot.lane.b32.xlu1 %v413_v32, %s832_s7  ;;  %416 = vrot.lane.b32.xlu0 %v412_v33, %s832_s7  ;;  %424 = vst [vmem:[#allocation1] ss:$2 sm:$0xff] %v248_v31  ;;  %s652_s7 = sshll.u32 %s232_s6, 3 }
  0x86   : > { %s234_s12 = scalar_lea.vmem [#allocation5], %s652_s7 }
  0x87   : > { %s572_s13 = sshll.u32 %s234_s12, 4  ;;  %s573_s13 = int_to_ptr.vmem [resolvable:$true] %s572_s13 }
  0x8c   : > { %v962_v34 = vld.sshfl [vmem:[#allocation1] sm:$0xff pattern:$0x75316420]  ;;  %v964_v35 = vld.sshfl [vmem:[#allocation1 + $0x8] sm:$0xff pattern:$0x75316420] }
  0x8d   : > { %437 = vst [vmem:[#allocation1] ss:$2 sm:$0xff] %v929_v0 }
  0x94   : > { %v439_v36 = vld.sshfl [vmem:[#allocation1 + $0x8] sm:$0xff pattern:$0x75316420]  ;;  %v438_v37 = vld.sshfl [vmem:[#allocation1] sm:$0xff pattern:$0x75316420] }
  0x95   : > { %444 = vrot.lane.b32.xlu0 %v439_v36, %s833_s8  ;;  %442 = vrot.lane.b32.xlu2 %v438_v37, %s833_s8  ;;  %450 = vst [vmem:[#allocation1] ss:$2 sm:$0xff] %v249_v44  ;;  %s656_s8 = sshll.u32 %s887_s22, 3  ;;  %s560_s22 = scalar_lea.sflag [#allocation4], %s232_s6 }
  0x96   : > { %s570_s11 = scalar_lea.hbm %s1071_s5, %s656_s8 }
  0x97   : > { %v258_v38 = vpop.permute.xlu0 %257  ;;  %s574_s14 = sshll.u32 %s570_s11, 4  ;;  %s575_s14 = int_to_ptr.hbm [resolvable:$true] %s574_s14 }
  0x98   : > { %s769_s15 = sshra.s32 %s575_s14, 4  ;;  %s770_s15 = int_to_ptr.hbm [resolvable:$true] %s769_s15 }
  0x99   : > { %s771_s16 = scalar_lea.hbm %s770_s15, 8  ;;  %p776_p3 = scmp.lt.s32.totalorder %s770_s15, %s1071_s5 }
  0x9a   : > { %p772_p0 = scmp.ne.s32.totalorder %s770_s15, %s771_s16  ;;  %p777_p4 = scmp.lt.s32.totalorder %s775_s25, %s771_s16 }
  0x9c   : > { %p773_p1 = pnand %p772_p0, %p904_p5  ;;  %p778_p7 = por %p777_p4, %p776_p3 }
  0x9e   : > { %p774_p2 = pneg %p773_p1 }
  0x9f   : > { %v313_v40 = vpop.permute.xlu2 %312  ;;  %v260_v42 = vpop.permute.xlu0 %259 }
  0xa0   : > { %v264_v47 = vsel %vm263_vm0, %v258_v38, %v260_v42  ;;  %v265_v51 = vsel %vm263_vm0, %v260_v42, %v258_v38  ;;  %p779_p8 = pnand %p778_p7, %p774_p2 }
  0xa1   : > { %v273_v50 = vmul.f32 %v934_v5, %v264_v47  ;;  %v272_v54 = vmul.f32 %v932_v4, %v265_v51  ;;  %v451_v47 = vld.sshfl [vmem:[#allocation1] sm:$0xff pattern:$0x75316420] }
  0xa3   : > { %v276_v55 = vrot.slane %v273_v50, 4  ;;  %v834_v50 = vmov 0  }
  0xa4   : > { %724 = vset.pattern.permute.xlu1 %v834_v50  ;;  %723 = vset.pattern.permute.xlu0 %v834_v50 }
  0xa5   : > { %v278_v62 = vsel %vm277_vm3, %v272_v54, %v276_v55  ;;  %722 = vset.pattern.permute.xlu2 %v834_v50 }
  0xa6   : > { %v280_v6 = vadd.f32 %v278_v62, %v250_v60  ;;  %v516_v62 = vld [vmem:[%s1068_s2 + $0x10] sm:$0xff] }
  0xa7   : > { %v287_v39 = vpop.permute.xlu1 %286  ;;  %v315_v46 = vpop.permute.xlu2 %314 }
  0xa8   : > { %v317_v57 = vsel %vm316_vm2, %v313_v40, %v315_v46  ;;  %v318_v2 = vsel %vm316_vm2, %v315_v46, %v313_v40 }
  0xa9   : > { %v326_v61 = vmul.f32 %v944_v15, %v317_v57  ;;  %v325_v7 = vmul.f32 %v942_v14, %v318_v2  ;;  %v506_v57 = vld [vmem:[%s1069_s3] sm:$0xf]  ;;  %v515_v2 = vld [vmem:[%s1068_s2 + $0x8] sm:$0xff] }
  0xab   : > { %v329_v8 = vrot.slane %v326_v61, 4 }
  0xad   : > { %v330_v15 = vsel %vm277_vm3, %v325_v7, %v329_v8 }
  0xaf   : > { %v289_v43 = vpop.permute.xlu1 %288 }
  0xb0   : > { %v291_v52 = vsel %vm290_vm1, %v287_v39, %v289_v43  ;;  %v292_v59 = vsel %vm290_vm1, %v289_v43, %v287_v39 }
  0xb1   : > { %v300_v56 = vmul.f32 %v939_v10, %v291_v52  ;;  %v299_v63 = vmul.f32 %v937_v9, %v292_v59 }
  0xb3   : > { %v303_v1 = vrot.slane %v300_v56, 4 }
  0xb5   : > { %v304_v0 = vsel %vm277_vm3, %v299_v63, %v303_v1 }
  0xb6   : > { %v306_v13 = vadd.f32 %v304_v0, %v280_v6 }
  0xb8   : > { %v332_v23 = vadd.f32 %v330_v15, %v306_v13 }
  0xbf   : > { %v365_v58 = vpop.permute.xlu2 %364 }
  0xc7   : > { %v339_v48 = vpop.permute.xlu0 %338  ;;  %v341_v49 = vpop.permute.xlu1 %340 }
  0xc8   : > { %v343_v5 = vsel %vm342_vm4, %v339_v48, %v341_v49  ;;  %v344_v9 = vsel %vm342_vm4, %v341_v49, %v339_v48 }
  0xc9   : > { %v352_v10 = vmul.f32 %v949_v20, %v343_v5  ;;  %v351_v16 = vmul.f32 %v947_v19, %v344_v9  ;;  %v517_v5 = vld [vmem:[%s1068_s2 + $0x18] sm:$0xff] }
  0xcb   : > { %v355_v14 = vrot.slane %v352_v10, 4 }
  0xcd   : > { %v356_v27 = vsel %vm277_vm3, %v351_v16, %v355_v14 }
  0xce   : > { %v358_v33 = vadd.f32 %v356_v27, %v332_v23 }
  0xcf   : > { %v393_v12 = vpop.permute.xlu2 %392 }
  0xd7   : > { %v367_v3 = vpop.permute.xlu0 %366 }
  0xd8   : > { %v370_v11 = vsel %vm368_vm5, %v367_v3, %v365_v58  ;;  %v369_v21 = vsel %vm368_vm5, %v365_v58, %v367_v3  ;;  %v514_v3 = vld [vmem:[%s1068_s2] sm:$0xff] }
  0xd9   : > { %v378_v17 = vmul.f32 %v954_v25, %v370_v11  ;;  %v377_v28 = vmul.f32 %v952_v24, %v369_v21 }
  0xdb   : > { %v381_v19 = vrot.slane %v378_v17, 4 }
  0xdd   : > { %v382_v37 = vsel %vm277_vm3, %v377_v28, %v381_v19 }
  0xde   : > { %v384_v42 = vadd.f32 %v382_v37, %v358_v33 }
  0xe7   : > { %v391_v4 = vpop.permute.xlu1 %390 }
  0xe8   : > { %v396_v22 = vsel %vm394_vm6, %v393_v12, %v391_v4  ;;  %v395_v25 = vsel %vm394_vm6, %v391_v4, %v393_v12  ;;  %v549_v4 = vld [vmem:[%s1070_s4] sm:$0xff] }
  0xe9   : > { %v404_v31 = vmul.f32 %v959_v30, %v396_v22  ;;  %v403_v38 = vmul.f32 %v957_v29, %v395_v25  ;;  %v452_v30 = vld.sshfl [vmem:[#allocation1 + $0x8] sm:$0xff pattern:$0x75316420] }
  0xeb   : > { %v407_v39 = vrot.slane %v404_v31, 4 }
  0xed   : > { %v408_v43 = vsel %vm277_vm3, %v403_v38, %v407_v39 }
  0xee   : > { %v410_v29 = vadd.f32 %v408_v43, %v384_v42 }
  0xef   : > { %v443_v24 = vpop.permute.xlu2 %442 }
  0xf7   : > { %v419_v18 = vpop.permute.xlu1 %418  ;;  %v417_v20 = vpop.permute.xlu0 %416 }
  0xf8   : > { %v422_v26 = vsel %vm420_vm7, %v419_v18, %v417_v20  ;;  %v421_v36 = vsel %vm420_vm7, %v417_v20, %v419_v18 }
  0xf9   : > { %v430_v32 = vmul.f32 %v964_v35, %v422_v26  ;;  %v429_v40 = vmul.f32 %v962_v34, %v421_v36 }
  0xfb   : > { %v433_v41 = vrot.slane %v430_v32, 4 }
  0xfd   : > { %v434_v48 = vsel %vm277_vm3, %v429_v40, %v433_v41 }
  0xfe   : > { %v436_v52 = vadd.f32 %v434_v48, %v410_v29 }
 0x107   : > { %v445_v44 = vpop.permute.xlu0 %444 }
 0x108   : > { %v447_v46 = vsel %vm446_vm8, %v443_v24, %v445_v44  ;;  %v448_v35 = vsel %vm446_vm8, %v445_v44, %v443_v24 }
 0x109   : > { %v456_v49 = vmul.f32 %v452_v30, %v448_v35  ;;  %v455_v34 = vmul.f32 %v451_v47, %v447_v46 }
 0x10b   : > { %v459_v51 = vrot.slane %v456_v49, 4 }
 0x10d   : > { %v460_v53 = vsel %vm277_vm3, %v455_v34, %v459_v51 }
 0x10e   : > { %v462_v54 = vadd.f32 %v460_v53, %v436_v52 }
 0x110   : > { %464 = vst [vmem:[#allocation1] ss:$2 sm:$0xff] %v462_v54 }
 0x117   : > { %v466_v55 = vld.sshfl [vmem:[#allocation1 + $0x8] sm:$0xff pattern:$0x75316420]  ;;  %v465_v56 = vld.sshfl [vmem:[#allocation1] sm:$0xff pattern:$0x75316420] }
 0x118   : > { %471 = vrot.lane.b32.xlu2 %v466_v55, %s835_s9  ;;  %469 = vrot.lane.b32.xlu1 %v465_v56, %s835_s9  ;;  %482 = vst [vmem:[#allocation1] ss:$2 sm:$0xff] %v462_v54 }
 0x11f   : > { %v483_v58 = vld.sshfl [vmem:[#allocation1] sm:$0xff pattern:$0x75316420]  ;;  %v484_v59 = vld.sshfl [vmem:[#allocation1 + $0x8] sm:$0xff pattern:$0x75316420] }
 0x120   : > { %489 = vst [vmem:[#allocation1] ss:$2 sm:$0xff] %v462_v54  ;;  %509 = vperm.xlu2 %722, %v506_v57   ;;  %v485_v60 = vrot.slane %v483_v58, 4 }
 0x122   : > { %v486_v61 = vsel %vm277_vm3, %v484_v59, %v485_v60 }
 0x127   : > { %v491_v63 = vld.sshfl [vmem:[#allocation1 + $0x8] sm:$0xff pattern:$0x75316420]  ;;  %v490_v1 = vld.sshfl [vmem:[#allocation1] sm:$0xff pattern:$0x75316420] }
 0x128   : > { %496 = vrot.lane.b32.xlu1 %v491_v63, %s835_s9  ;;  %494 = vrot.lane.b32.xlu0 %v490_v1, %s835_s9 }
 0x129   : > { %536 = vperm.xlu2 %722, %v516_v62  }
 0x130   : > { %528 = vperm.xlu1 %724, %v515_v2   ;;  %521 = vperm.xlu0 %723, %v514_v3  }
 0x131   : > { %552 = vperm.xlu2 %722, %v549_v4  }
 0x138   : > { %544 = vperm.xlu1 %724, %v517_v5  }
 0x172   : > { %v472_v7 = vpop.permute.xlu2 %471 }
 0x17a   : > { %v510_v12 = vpop.permute.xlu2 %509 }
 0x183   : > { %v537_v26 = vpop.permute.xlu2 %536 }
 0x18a   : > { %v470_v6 = vpop.permute.xlu1 %469 }
 0x18b   : > { %v475_v8 = vsel %vm473_vm9, %v472_v7, %v470_v6  ;;  %v474_v10 = vsel %vm473_vm9, %v470_v6, %v472_v7  ;;  %v553_v24 = vpop.permute.xlu2 %552 }
 0x18c   : > { %v478_v0 = vrot.slane %v475_v8, 4 }
 0x18e   : > { %v479_v9 = vsel %vm277_vm3, %v474_v10, %v478_v0 }
 0x18f   : > { %v481_v11 = vadd.f32 %v479_v9, %v462_v54 }
 0x191   : > { %v488_v17 = vadd.f32 %v486_v61, %v481_v11 }
 0x19a   : > { %v497_v13 = vpop.permute.xlu1 %496  ;;  %v495_v15 = vpop.permute.xlu0 %494 }
 0x19b   : > { %v498_v16 = vsel %vm473_vm9, %v495_v15, %v497_v13  ;;  %v499_v18 = vsel %vm473_vm9, %v497_v13, %v495_v15 }
 0x19c   : > { %v502_v14 = vrot.slane %v498_v16, 4 }
 0x19e   : > { %v503_v20 = vsel %vm277_vm3, %v499_v18, %v502_v14 }
 0x19f   : > { %v505_v45 = vadd.f32 %v503_v20, %v488_v17 }
 0x1a1   : > { %v512_v21 = vadd.f32 %v510_v12, %v505_v45 }
 0x1a2   : > { %v529_v22 = vpop.permute.xlu1 %528  ;;  %v522_v27 = vpop.permute.xlu0 %521 }
 0x1a3   : > { %v513_v23 = vmax.f32 %v512_v21, 0.0 }
 0x1a5   : > { %v525_v28 = vperm.slane %v513_v23, 1  ;;  %v518_v19 = vperm.slane %v513_v23, 0  ;;  %v533_v31 = vperm.slane %v513_v23, 2  ;;  %v541_v37 = vperm.slane %v513_v23, 3 }
 0x1a7   : > { %v531_v25 = vmul.f32 %v529_v22, %v525_v28  ;;  %v524_v32 = vmul.f32 %v522_v27, %v518_v19  ;;  %v539_v36 = vmul.f32 %v537_v26, %v533_v31 }
 0x1a9   : > { %v532_v33 = vadd.f32 %v531_v25, %v524_v32 }
 0x1aa   : > { %v545_v38 = vpop.permute.xlu1 %544 }
 0x1ab   : > { %v540_v39 = vadd.f32 %v539_v36, %v532_v33  ;;  %v547_v40 = vmul.f32 %v545_v38, %v541_v37 }
 0x1ad   : > { %v548_v41 = vadd.f32 %v547_v40, %v540_v39 }
 0x1af   : > { %v555_v42 = vadd.f32 %v553_v24, %v548_v41 }
 0x1b1   : > { %v556_v30 = vmax.f32 %v555_v42, 0.0 }
 0x1b3   : > { %558 = vst.msk [vmem:[%s234_s12] sm:$0xff] %vm557_vm10, %v556_v30 }
 0x1b4   : > { %782 = shalt.err (!%p779_p8)
}
 0x1b5   : > { %664 = dma.vmem_to_hbm [thread:$0]  (%p904_p5), %s573_s13, 128, %s575_s14, %s560_s22  }
 0x1b6 PF: > { %p676_p9 = scmp.ge.s32.totalorder %s821_s21, 2  ;;  %s586_s6 = sand.u32 1, %s809_s18  }
 0x1b7   : > { %s587_s7 = scalar_lea.sflag [#allocation4], %s586_s6 }
 0x1b8   : > { %p671_p10 = pnand %p676_p9, %p908_p6 }
 0x1ba   : > { %p672_p11 = pneg %p671_p10 }
 0x1bc   : > { %804 = dma.done.wait (%p672_p11), %s587_s7, 128  }
 0x1bd   : > { %806 = vsyncadd (%p672_p11), %s587_s7, 4294967168  ;;  %p16_p12 = scmp.ge.s32.totalorder %s891_s24, 4   ;;  %s1074_s18 = smov %s813_s19 }
 0x1be   : > { %s1075_s19 = smov %s817_s20  ;;  %s1076_s20 = smov %s902_s27 }
 0x1bf   : > { %s1077_s21 = smov %s891_s24  ;;  %18 = sbr.rel (!%p16_p12) target bundleno = 4 (0x4), region = 80 }
 0x1c4   :  { %593 = vsyncpa [#allocation3], 1 }
 0x1c5   :  { %595 = vsyncpa [#allocation3 + $0x1], 1 }
 0x1c6   :  { %596 = vsyncpa [#allocation4], 1 }
 0x1c7   :  { %598 = vsyncpa [#allocation4 + $0x1], 1 }

</bundles_post_ra>
